<compile_context>
chip_gen: v5e
topology: v5e:2x2
jax: 0.10.0
libtpu: 0.0.40
codegen_flags: <defaults>
</compile_context>

<pallas_src>
import functools

import jax
import jax.numpy as jnp
from jax import lax
from jax.experimental import pallas as pl
from jax.experimental.pallas import tpu as pltpu

_LANE = 128
_SUB = 8
_ALIGN = _SUB * _LANE                 # 1024-element vreg tile
_CHUNK_ROWS = 1024                    # in-kernel compute chunk (512 KiB f32)
_TILE_BYTES = 8 * 1024 * 1024         # HBM bytes per input per grid step
_VMEM_LIMIT = 48 * 1024 * 1024        # < v7x 64 MiB physical, > v5e 16 MiB default


def _cdiv(a, b):
    return (a + b - 1) // b


def _mse_kernel(y_ref, t_ref, out_ref, acc_ref, *,
                rows, tile_rows, chunk_rows, inner, needs_mask):
    c = pl.program_id(0)              # "parallel" split axis (per-TensorCore)
    i = pl.program_id(1)              # sequential block axis

    @pl.when(i == 0)
    def _():
        acc_ref[...] = jnp.zeros_like(acc_ref)

    # Logical (unclamped) first row of this grid step.  The input index_map
    # clamps the DMA window in-bounds; rows past `rows` are masked below.
    tile_start = (c * inner + i) * tile_rows
    n_chunks = tile_rows // chunk_rows

    def accumulate(masked):
        def add_chunk(vals_y, vals_t, row0):
            d = vals_y.astype(jnp.float32) - vals_t.astype(jnp.float32)
            sq = d * d
            if masked:
                row_ids = (lax.broadcasted_iota(jnp.int32, sq.shape, 0) + row0)
                sq = jnp.where(row_ids < rows, sq, jnp.float32(0.0))
            # vreg-wise VPU adds into the (8, 128) accumulator; the only
            # cross-lane reduce happens once, in the finalize branch.
            acc_ref[...] += sq.reshape(-1, _SUB, _LANE).sum(axis=0)

        if n_chunks == 1:
            add_chunk(y_ref[...], t_ref[...], tile_start)
        else:
            def body(j, carry):
                off = pl.multiple_of(j * chunk_rows, _SUB)
                add_chunk(y_ref[pl.ds(off, chunk_rows), :],
                          t_ref[pl.ds(off, chunk_rows), :],
                          tile_start + off)
                return carry
            lax.fori_loop(0, n_chunks, body, 0)

    if needs_mask:
        edge = tile_start + tile_rows > rows

        @pl.when(edge)
        def _():
            accumulate(True)

        @pl.when(jnp.logical_not(edge))
        def _():
            accumulate(False)
    else:
        accumulate(False)

    @pl.when(i == pl.num_programs(1) - 1)
    def _():
        out_ref[0, 0] = jnp.sum(acc_ref[...])


def mse_loss(y, target, *, tile_bytes=_TILE_BYTES):
    """Pallas equivalent of MSE_Loss.forward(y, target) -> scalar f32."""
    assert y.shape == target.shape, "y and target must have the same shape"
    n = int(y.size)
    assert n > 0, "mean of an empty tensor is undefined"

    yf = y.reshape(-1)
    tf = target.reshape(-1)

    # 1024-aligned body goes through the kernel; the tiny tail (<1024 elems)
    # is summed with plain jnp -- no full-array pad copy is ever made.
    body = (n // _ALIGN) * _ALIGN
    if body < n:
        dt = yf[body:].astype(jnp.float32) - tf[body:].astype(jnp.float32)
        tail_sum = jnp.sum(dt * dt)
    else:
        tail_sum = jnp.float32(0.0)

    if body == 0:
        return tail_sum / jnp.float32(n)

    rows = body // _LANE                                   # multiple of 8
    y2 = yf.reshape(rows, _LANE) if body == n else yf[:body].reshape(rows, _LANE)
    t2 = tf.reshape(rows, _LANE) if body == n else tf[:body].reshape(rows, _LANE)

    # Byte-based block sizing: fixed HBM bytes per step regardless of dtype.
    itemsize = jnp.dtype(y2.dtype).itemsize
    budget_rows = max(_SUB, (int(tile_bytes) // (_LANE * itemsize)) // _SUB * _SUB)
    tile_rows = min(budget_rows, rows)
    if tile_rows > _CHUNK_ROWS:
        tile_rows = (tile_rows // _CHUNK_ROWS) * _CHUNK_ROWS
        chunk_rows = _CHUNK_ROWS
    else:
        chunk_rows = tile_rows

    n_blocks = _cdiv(rows, tile_rows)
    # 2-way split so both v7x TensorCores stream half of the blocks each.
    # Avoid the split when an odd, tiny block count would waste a duplicated
    # (fully masked) step.
    if n_blocks >= 2 and (n_blocks % 2 == 0 or n_blocks >= 8):
        n_split = 2
    else:
        n_split = 1
    inner = _cdiv(n_blocks, n_split)
    needs_mask = (n_split * inner * tile_rows != rows)

    def in_map(c, i):
        # Clamp so the DMA window never starts past the array end; overshoot
        # steps are fully masked inside the kernel.
        return (jnp.minimum(c * inner + i, n_blocks - 1), 0)

    kernel = functools.partial(
        _mse_kernel, rows=rows, tile_rows=tile_rows, chunk_rows=chunk_rows,
        inner=inner, needs_mask=needs_mask)

    partial_sums = pl.pallas_call(
        kernel,
        out_shape=jax.ShapeDtypeStruct((n_split, 1), jnp.float32),
        grid=(n_split, inner),
        in_specs=[
            pl.BlockSpec((tile_rows, _LANE), in_map),
            pl.BlockSpec((tile_rows, _LANE), in_map),
        ],
        out_specs=pl.BlockSpec((1, 1), lambda c, i: (c, 0),
                               memory_space=pltpu.SMEM),
        scratch_shapes=[pltpu.VMEM((_SUB, _LANE), jnp.float32)],
        compiler_params=pltpu.CompilerParams(
            dimension_semantics=("parallel", "arbitrary"),
            vmem_limit_bytes=_VMEM_LIMIT),
        cost_estimate=pl.CostEstimate(
            flops=3 * body, transcendentals=0,
            bytes_accessed=2 * body * itemsize),
    )(y2, t2)

    return (jnp.sum(partial_sums) + tail_sum) / jnp.float32(n)


if __name__ == "__main__":
    key = jax.random.PRNGKey(0)
    ks = jax.random.split(key, 12)

    def ref_mse(a, b):
        return jnp.mean((a.astype(jnp.float32) - b.astype(jnp.float32)) ** 2)

    # 1) Main case: small prediction/target pair, aligned fast path.
    y = jax.random.normal(ks[0], (2, 4, 16, 16), dtype=jnp.float32)
    t = jax.random.normal(ks[1], (2, 4, 16, 16), dtype=jnp.float32)
    out = jax.block_until_ready(mse_loss(y, t))
    assert jnp.allclose(out, ref_mse(y, t), rtol=1e-5, atol=1e-6), (out, ref_mse(y, t))

    # 2) Tail-only path (n < 1024): handled entirely in the wrapper.
    y = jax.random.normal(ks[2], (3, 5, 7), dtype=jnp.float32)
    t = jax.random.normal(ks[3], (3, 5, 7), dtype=jnp.float32)
    out = jax.block_until_ready(mse_loss(y, t))
    assert jnp.allclose(out, ref_mse(y, t), rtol=1e-5, atol=1e-6)

    # 3) Body + tail (n not a multiple of 1024).
    y = jax.random.normal(ks[4], (5, 250), dtype=jnp.float32)
    t = jax.random.normal(ks[5], (5, 250), dtype=jnp.float32)
    out = jax.block_until_ready(mse_loss(y, t))
    assert jnp.allclose(out, ref_mse(y, t), rtol=1e-5, atol=1e-6)

    # 4) bf16 + forced small tiles: 2-way split with masked partial last block.
    y = jax.random.normal(ks[6], (40, 128), dtype=jnp.bfloat16)
    t = jax.random.normal(ks[7], (40, 128), dtype=jnp.bfloat16)
    out = jax.block_until_ready(mse_loss(y, t, tile_bytes=24 * 128 * 2))
    assert jnp.allclose(out, ref_mse(y, t), rtol=1e-5, atol=1e-6)

    # 5) Odd block count >= 8: exercises the clamped, fully-masked overshoot step.
    y = jax.random.normal(ks[8], (72, 128), dtype=jnp.float32)
    t = jax.random.normal(ks[9], (72, 128), dtype=jnp.float32)
    out = jax.block_until_ready(mse_loss(y, t, tile_bytes=8 * 128 * 4))
    assert jnp.allclose(out, ref_mse(y, t), rtol=1e-5, atol=1e-6)

    # 6) Multi-chunk in-kernel loop (rows > 1024) with default tile sizing.
    y = jax.random.normal(ks[10], (256, 1024), dtype=jnp.float32)
    t = jax.random.normal(ks[11], (256, 1024), dtype=jnp.float32)
    out = jax.block_until_ready(mse_loss(y, t))
    assert jnp.allclose(out, ref_mse(y, t), rtol=1e-5, atol=1e-6)

    print("KERNEL_OK")
</pallas_src>

<mosaic_0001>
module attributes {stable_mosaic.version = 11 : i64} {
  func.func @_mse_kernel(%arg0: i32, %arg1: i32, %arg2: memref<16x128xf32, #tpu.memory_space<vmem>>, %arg3: memref<16x128xf32, #tpu.memory_space<vmem>>, %arg4: memref<1x1xf32, #tpu.memory_space<smem>>, %arg5: memref<8x128xf32, #tpu.memory_space<vmem>>) attributes {dimension_semantics = [#tpu.dimension_semantics<parallel>, #tpu.dimension_semantics<arbitrary>], iteration_bounds = array<i64: 1, 1>, scalar_prefetch = 0 : i64, scratch_operands = 1 : i64, tpu.core_type = #tpu.core_type<tc>, window_params = [{transform_indices = @transform_0, window_bounds = array<i64: 16, 128>}, {transform_indices = @transform_1, window_bounds = array<i64: 16, 128>}, {transform_indices = @transform_2, window_bounds = array<i64: 1, 1>}]} {
    %c0_i32 = arith.constant 0 : i32
    %0 = arith.cmpi eq, %arg1, %c0_i32 : i32
    %1 = arith.extui %0 : i1 to i32
    %c0_i32_0 = arith.constant 0 : i32
    %2 = arith.cmpi ne, %1, %c0_i32_0 : i32
    scf.if %2 {
      %cst_10 = arith.constant 0.000000e+00 : f32
      %15 = vector.broadcast %cst_10 : f32 to vector<8x128xf32>
      %c0_11 = arith.constant 0 : index
      %c0_12 = arith.constant 0 : index
      %16 = vector.load %arg5[%c0_11, %c0_12] : memref<8x128xf32, #tpu.memory_space<vmem>>, vector<8x128xf32>
      tpu.vector_store %arg5[%c0_11, %c0_12], %15 {strides = array<i32>} : memref<8x128xf32, #tpu.memory_space<vmem>>, vector<8x128xf32>,
    } else {
    }
    %c0 = arith.constant 0 : index
    %c0_1 = arith.constant 0 : index
    %3 = vector.load %arg2[%c0, %c0_1] : memref<16x128xf32, #tpu.memory_space<vmem>>, vector<16x128xf32>
    %c0_2 = arith.constant 0 : index
    %c0_3 = arith.constant 0 : index
    %4 = vector.load %arg3[%c0_2, %c0_3] : memref<16x128xf32, #tpu.memory_space<vmem>>, vector<16x128xf32>
    %5 = arith.subf %3, %4 : vector<16x128xf32>
    %6 = arith.mulf %5, %5 : vector<16x128xf32>
    %c0_4 = arith.constant 0 : index
    %c0_5 = arith.constant 0 : index
    %7 = vector.load %arg5[%c0_4, %c0_5] : memref<8x128xf32, #tpu.memory_space<vmem>>, vector<8x128xf32>
    %8 = vector.shape_cast %6 : vector<16x128xf32> to vector<2x8x128xf32>
    %cst = arith.constant dense<0.000000e+00> : vector<8x128xf32>
    %9 = vector.multi_reduction <add>, %8, %cst [0] : vector<2x8x128xf32> to vector<8x128xf32>
    %10 = arith.addf %7, %9 : vector<8x128xf32>
    %c0_6 = arith.constant 0 : index
    %c0_7 = arith.constant 0 : index
    %11 = vector.load %arg5[%c0_6, %c0_7] : memref<8x128xf32, #tpu.memory_space<vmem>>, vector<8x128xf32>
    tpu.vector_store %arg5[%c0_6, %c0_7], %10 {strides = array<i32>} : memref<8x128xf32, #tpu.memory_space<vmem>>, vector<8x128xf32>,
    %c0_i32_8 = arith.constant 0 : i32
    %12 = arith.cmpi eq, %arg1, %c0_i32_8 : i32
    %13 = arith.extui %12 : i1 to i32
    %c0_i32_9 = arith.constant 0 : i32
    %14 = arith.cmpi ne, %13, %c0_i32_9 : i32
    scf.if %14 {
      %c0_10 = arith.constant 0 : index
      %c0_11 = arith.constant 0 : index
      %15 = vector.load %arg5[%c0_10, %c0_11] : memref<8x128xf32, #tpu.memory_space<vmem>>, vector<8x128xf32>
      %16 = vector.shape_cast %15 : vector<8x128xf32> to vector<1x8x128xf32>
      %cst_12 = arith.constant dense<0.000000e+00> : vector<1xf32>
      %17 = vector.multi_reduction <add>, %16, %cst_12 [1, 2] : vector<1x8x128xf32> to vector<1xf32>
      %18 = vector.shape_cast %17 : vector<1xf32> to vector<1x1x1xf32>
      %19 = vector.extract %18[0, 0, 0] : f32 from vector<1x1x1xf32>
      %c0_13 = arith.constant 0 : index
      %c0_14 = arith.constant 0 : index
      %20 = memref.load %arg4[%c0_13, %c0_14] : memref<1x1xf32, #tpu.memory_space<smem>>
      memref.store %19, %arg4[%c0_13, %c0_14] : memref<1x1xf32, #tpu.memory_space<smem>>
    } else {
    }
    return
  }
  func.func @transform_0(%arg0: i32, %arg1: i32) -> (i32, i32) {
    %c1_i32 = arith.constant 1 : i32
    %0 = arith.muli %arg0, %c1_i32 : i32
    %1 = arith.addi %0, %arg1 : i32
    %c0_i32 = arith.constant 0 : i32
    %2 = arith.minsi %1, %c0_i32 : i32
    %c0_i32_0 = arith.constant 0 : i32
    %c0_i32_1 = arith.constant 0 : i32
    return %2, %c0_i32_0 : i32, i32
  }
  func.func @transform_1(%arg0: i32, %arg1: i32) -> (i32, i32) {
    %c1_i32 = arith.constant 1 : i32
    %0 = arith.muli %arg0, %c1_i32 : i32
    %1 = arith.addi %0, %arg1 : i32
    %c0_i32 = arith.constant 0 : i32
    %2 = arith.minsi %1, %c0_i32 : i32
    %c0_i32_0 = arith.constant 0 : i32
    %c0_i32_1 = arith.constant 0 : i32
    return %2, %c0_i32_0 : i32, i32
  }
  func.func @transform_2(%arg0: i32, %arg1: i32) -> (i32, i32) {
    %c0_i32 = arith.constant 0 : i32
    %c0_i32_0 = arith.constant 0 : i32
    return %arg0, %c0_i32 : i32, i32
  }
}

</mosaic_0001>

<bundles_post_ra>
// kernel: tpu_custom_call.1
= control target key start
LH: loop header
LB: loop body
LE: loop exit
PB: predicated region body
PF: predicated region fallthrough
CT: control target
= control target key end

     0   :  { %7 = vsyncpa [#allocation4], 0  ;;  %s219_s0 = inlined_call_operand.hbm [shape: f32[16,128], index: 0, kind: input, shape index: {}]   ;;  %s220_s1 = inlined_call_operand.hbm [shape: f32[16,128], index: 1, kind: input, shape index: {}]   ;;  %s221_s2 = inlined_call_operand.hbm [shape: f32[1,1], index: 2, kind: output, shape index: {}]  }
   0x1   :  { %8 = vsyncpa [#allocation7], 0 }
   0x2   :  { %9 = vsyncpa [#allocation5], 0  ;;  %s20_s11 = sshll.u32 %s219_s0, 4  ;;  %s190_s12 = smov [#allocation3]   ;;  %s21_s11 = int_to_ptr.hbm [resolvable:$true] %s20_s11 }
   0x3   :  { %s22_s13 = sshll.u32 %s190_s12, 4  ;;  %s39_s16 = sshll.u32 %s220_s1, 4  ;;  %s23_s13 = int_to_ptr.vmem [resolvable:$true] %s22_s13  ;;  %s40_s16 = int_to_ptr.hbm [resolvable:$true] %s39_s16 }
   0x4   :  { %s191_s17 = smov 128   ;;  %s192_s18 = smov 8  }
   0x5   :  { %28 = dma.hbm_to_vmem [thread:$0]  %s21_s11, 256, %s23_s13, [#allocation4], %s191_s17, %s191_s17, %s192_s18  }
   0x6   :  { %s193_s19 = smov [#allocation6]  }
   0x7   :  { %s41_s20 = sshll.u32 %s193_s19, 4  ;;  %s42_s20 = int_to_ptr.vmem [resolvable:$true] %s41_s20 }
   0x8   :  { %47 = dma.hbm_to_vmem [thread:$0]  %s40_s16, 256, %s42_s20, [#allocation7], %s191_s17, %s191_s17, %s192_s18  }
   0x9   :  { %184 = dma.done.wait [#allocation4], 256  }
   0xa   :  { %185 = vsyncadd [#allocation4], 4294967040 }
   0xb   :  { %186 = dma.done.wait [#allocation7], 256  }
   0xc   :  { %187 = vsyncadd [#allocation7], 4294967040  ;;  %v69_v0 = vld [vmem:[#allocation3] sm:$0xff]  ;;  %v70_v1 = vld [vmem:[#allocation3 + $0x8] sm:$0xff]  ;;  %s101_s21 = sshll.u32 %s221_s2, 4  ;;  %s194_s23 = smov [#allocation8]   ;;  %s102_s21 = int_to_ptr.hbm [resolvable:$true] %s101_s21 }
   0xd   :  { %v71_v2 = vld [vmem:[#allocation6] sm:$0xff]  ;;  %v72_v3 = vld [vmem:[#allocation6 + $0x8] sm:$0xff] }
   0xe   :  { %v73_v4 = vsub.f32 %v69_v0, %v71_v2  ;;  %v74_v5 = vsub.f32 %v70_v1, %v72_v3 }
  0x10   :  { %v75_v6 = vmul.f32 %v73_v4, %v73_v4  ;;  %v76_v7 = vmul.f32 %v74_v5, %v74_v5 }
  0x12   :  { %v78_v8 = vadd.f32 %v76_v7, %v75_v6 }
  0x14   :  { %85 = vadd.xlane.f32.xlu0 %v78_v8 }
  0x87   :  { %v86_v9 = vpop.xlane.xlu0 %85 }
  0x88   :  { %v87_v10 = vrot.slane %v86_v9, 4 }
  0x8a   :  { %v88_v11 = vadd.f32 %v87_v10, %v86_v9 }
  0x8c   :  { %v89_v12 = vrot.slane %v88_v11, 2 }
  0x8e   :  { %v90_v13 = vadd.f32 %v89_v12, %v88_v11 }
  0x90   :  { %v91_v14 = vrot.slane %v90_v13, 1 }
  0x92   :  { %v92_v15 = vadd.f32 %v91_v14, %v90_v13 }
  0x94   :  { %117 = vpush %v92_v15 }
  0xc5   :  { %s118_s22 = spop %117 }
  0xc6   :  { %95 = sst [smem:[#allocation8]] %s118_s22 }
  0xc7   :  { %104 = dma.smem_to_hbm %s194_s23, 16, %s102_s21, [#allocation5]  }
  0xc8   :  { %188 = dma.done.wait [#allocation5], 16  }
  0xc9   :  { %189 = vsyncadd [#allocation5], 4294967280 }
  0xca   :  { %109 = sfence }
  0xcb   :  { %110 = vsyncpa [#allocation4], 1 }
  0xcc   :  { %111 = vsyncpa [#allocation7], 1 }
  0xcd   :  { %112 = vsyncpa [#allocation5], 1 }

</bundles_post_ra>
